<compile_context>
chip_gen: v5e
topology: v5e:2x2
jax: 0.10.0
libtpu: 0.0.40
codegen_flags: <defaults>
</compile_context>

<pallas_src>
import jax
import jax.numpy as jnp
from jax.experimental import pallas as pl
from jax.experimental.pallas import tpu as pltpu


def _round_up(x, m):
    return ((x + m - 1) // m) * m


def _prototype_kernel(x_ref, w_ref, scale_ref, o_ref):
    # x_ref:     (tm, tk)  input tile (original dtype, cast to bf16 for the MXU)
    # w_ref:     (tk, tn)  bf16 tile of W^T  (weight stored as [D, C])
    # scale_ref: (tm, 1)   f32 per-row scale = rsqrt(max(||x||^2, eps^2)) / tau
    # o_ref:     (tm, tn)  f32 output block; doubles as the K accumulator
    k = pl.program_id(2)

    partial = jnp.dot(
        x_ref[...].astype(jnp.bfloat16),
        w_ref[...],
        preferred_element_type=jnp.float32,
    )

    @pl.when(k == 0)
    def _init():
        o_ref[...] = partial

    @pl.when(k > 0)
    def _accumulate():
        o_ref[...] += partial

    @pl.when(k == pl.num_programs(2) - 1)
    def _finalize():
        o_ref[...] = o_ref[...] * scale_ref[...]


def prototype_forward(x, weight_t, tau=0.05, *, tm=None, tn=None, tk=None):
    """Forward pass of Prototype.

    x:        [B, D]  input features.
    weight_t: [D, C]  pre-transposed, row-normalized Linear weight (W^T),
                      ideally already bf16 (cast here otherwise).
    returns:  [B, C]  logits = F.normalize(x) @ W^T / tau, float32.
    """
    B, D = x.shape
    D2, C = weight_t.shape
    assert D == D2, f"feature-dim mismatch: x has {D}, weight_t has {D2}"

    # ---- tile selection -------------------------------------------------
    if tm is None:
        # all of B in one i block when modest -> weight streamed once from HBM
        tm = min(512, _round_up(B, 16))
    if tk is None:
        # collapse the K axis for moderate D (no K loop, no acc traffic)
        tk = min(2048, _round_up(D, 128))
    if tn is None:
        cp0 = _round_up(C, 128)
        if cp0 <= 256:
            tn = cp0
        elif cp0 % 256 == 0:
            tn = 256          # even j-tile count -> both v7x TensorCores busy
        else:
            tn = 128
    assert tm % 8 == 0 and tn % 128 == 0 and tk % 128 == 0

    Dp = _round_up(D, tk)
    Cp = _round_up(C, tn)

    # ---- per-row normalization scale (one cheap fused pass over x) ------
    # F.normalize: x / max(||x||, 1e-12) == x * rsqrt(max(||x||^2, 1e-24))
    xf = x.astype(jnp.float32)
    ssq = jnp.sum(xf * xf, axis=1, keepdims=True)
    scale = jax.lax.rsqrt(jnp.maximum(ssq, 1e-24)) * (1.0 / tau)  # [B, 1] f32

    # ---- operand prep: pad only what is needed ---------------------------
    # B is handled by pl.cdiv raggedness (no activation copy); only pad the
    # contraction dim of x when D % tk != 0 (zeros add nothing to the dot).
    x_p = x if Dp == D else jnp.pad(x, ((0, 0), (0, Dp - D)))
    w_p = weight_t.astype(jnp.bfloat16)          # no-op if already bf16
    if Dp != D or Cp != C:
        w_p = jnp.pad(w_p, ((0, Dp - D), (0, Cp - C)))

    grid = (pl.cdiv(B, tm), Cp // tn, Dp // tk)

    cost = pl.CostEstimate(
        flops=2 * B * Cp * Dp,
        transcendentals=0,
        bytes_accessed=(x_p.size * x_p.dtype.itemsize
                        + w_p.size * w_p.dtype.itemsize
                        + B * Cp * 4 + B * 4),
    )

    out = pl.pallas_call(
        _prototype_kernel,
        out_shape=jax.ShapeDtypeStruct((B, Cp), jnp.float32),
        grid_spec=pltpu.PrefetchScalarGridSpec(
            num_scalar_prefetch=0,
            grid=grid,
            in_specs=[
                pl.BlockSpec((tm, tk), lambda i, j, k: (i, k)),   # x tile
                pl.BlockSpec((tk, tn), lambda i, j, k: (k, j)),   # W^T tile (bf16)
                pl.BlockSpec((tm, 1), lambda i, j, k: (i, 0)),    # per-row scale
            ],
            out_specs=pl.BlockSpec((tm, tn), lambda i, j, k: (i, j)),
        ),
        compiler_params=pltpu.CompilerParams(
            dimension_semantics=("parallel", "parallel", "arbitrary"),
        ),
        cost_estimate=cost,
    )(x_p, w_p, scale)

    return out if Cp == C else out[:, :C]


def init_prototype_params(key, num_classes, input_size):
    """nn.Linear default-style init + weight_norm(), done once.

    Returns W^T of shape [input_size, num_classes] in bf16 (lane-dense class
    axis for the kernel RHS; bf16 so the MXU runs at native rate and the
    weight HBM stream is halved).
    """
    bound = 1.0 / (input_size ** 0.5)
    w = jax.random.uniform(
        key, (num_classes, input_size), dtype=jnp.float32, minval=-bound, maxval=bound
    )
    w = w / jnp.linalg.norm(w, ord=2, axis=1, keepdims=True)   # weight_norm()
    return w.T.astype(jnp.bfloat16)                            # [D, C] bf16


# ---------------------------- references / checks ---------------------------

def _ref_f32(x, weight_t, tau):
    """Plain f32 reference matching the PyTorch forward."""
    xn = x / jnp.maximum(jnp.linalg.norm(x, axis=1, keepdims=True), 1e-12)
    return (xn @ weight_t.astype(jnp.float32)) / tau


def _ref_bf16_matched(x, weight_t, tau):
    """Reference with the same bf16 operand rounding the kernel uses."""
    xf = x.astype(jnp.float32)
    inv_n = jax.lax.rsqrt(jnp.maximum(jnp.sum(xf * xf, axis=1, keepdims=True), 1e-24))
    xb = x.astype(jnp.bfloat16).astype(jnp.float32)
    wb = weight_t.astype(jnp.bfloat16).astype(jnp.float32)
    dot = jnp.dot(xb, wb, precision=jax.lax.Precision.HIGHEST)
    return dot * inv_n * (1.0 / tau)


def _check(out, ref, name, atol, rtol):
    ok = bool(jnp.allclose(out, ref, atol=atol, rtol=rtol))
    max_diff = float(jnp.max(jnp.abs(out - ref)))
    assert ok, f"{name} mismatch vs reference: max |diff| = {max_diff}"


if __name__ == "__main__":
    key = jax.random.PRNGKey(0)
    k_x, k_w, k_x2, k_w2 = jax.random.split(key, 4)

    # --- Test 1: small shapes implied by the module ------------------------
    batch, input_size, num_classes, tau = 16, 32, 16, 0.05
    x = jax.random.normal(k_x, (batch, input_size), dtype=jnp.float32)
    weight_t = init_prototype_params(k_w, num_classes, input_size)   # [D, C] bf16

    fwd = jax.jit(lambda a, w: prototype_forward(a, w, tau=tau))
    out = jax.block_until_ready(fwd(x, weight_t))
    assert out.shape == (batch, num_classes)
    _check(out, _ref_bf16_matched(x, weight_t, tau), "test1/bf16-matched", 2e-3, 2e-3)
    _check(out, _ref_f32(x, weight_t, tau), "test1/f32", 5e-2, 5e-2)

    # --- Test 2: multi-tile grid (2 i, 3 j, 3 k blocks) + D padding --------
    b2, d2, c2, tau2 = 32, 320, 384, 0.1
    x2 = jax.random.normal(k_x2, (b2, d2), dtype=jnp.float32)
    w2 = init_prototype_params(k_w2, c2, d2)                          # [320, 384] bf16
    fwd2 = jax.jit(lambda a, w: prototype_forward(a, w, tau=tau2, tm=16, tn=128, tk=128))
    out2 = jax.block_until_ready(fwd2(x2, w2))
    assert out2.shape == (b2, c2)
    _check(out2, _ref_bf16_matched(x2, w2, tau2), "test2/bf16-matched", 2e-3, 2e-3)
    _check(out2, _ref_f32(x2, w2, tau2), "test2/f32", 5e-2, 5e-2)

    print("KERNEL_OK")
</pallas_src>

<mosaic_0001>
module attributes {stable_mosaic.version = 11 : i64} {
  func.func @_prototype_kernel(%arg0: i32, %arg1: i32, %arg2: i32, %arg3: memref<16x128xf32, #tpu.memory_space<vmem>>, %arg4: memref<128x128xbf16, #tpu.memory_space<vmem>>, %arg5: memref<16x1xf32, #tpu.memory_space<vmem>>, %arg6: memref<16x128xf32, #tpu.memory_space<vmem>>) attributes {dimension_semantics = [#tpu.dimension_semantics<parallel>, #tpu.dimension_semantics<parallel>, #tpu.dimension_semantics<arbitrary>], iteration_bounds = array<i64: 1, 1, 1>, scalar_prefetch = 0 : i64, scratch_operands = 0 : i64, tpu.core_type = #tpu.core_type<tc>, window_params = [{transform_indices = @transform_0, window_bounds = array<i64: 16, 128>}, {transform_indices = @transform_1, window_bounds = array<i64: 128, 128>}, {transform_indices = @transform_2, window_bounds = array<i64: 16, 1>}, {transform_indices = @transform_3, window_bounds = array<i64: 16, 128>}]} {
    %c0 = arith.constant 0 : index
    %c0_0 = arith.constant 0 : index
    %0 = vector.load %arg3[%c0, %c0_0] : memref<16x128xf32, #tpu.memory_space<vmem>>, vector<16x128xf32>
    %1 = arith.truncf %0 : vector<16x128xf32> to vector<16x128xbf16>
    %c0_1 = arith.constant 0 : index
    %c0_2 = arith.constant 0 : index
    %2 = vector.load %arg4[%c0_1, %c0_2] : memref<128x128xbf16, #tpu.memory_space<vmem>>, vector<128x128xbf16>
    %cst = arith.constant dense<0.000000e+00> : vector<16x128xf32>
    %3 = tpu.matmul %1, %2, %cst {dimension_numbers = #tpu.dot_dimension_numbers<[1], [0], [0], [1], [0, 0, 1, 1], [], []>} : vector<16x128xbf16>, vector<128x128xbf16>, vector<16x128xf32> -> vector<16x128xf32>
    %c0_i32 = arith.constant 0 : i32
    %4 = arith.cmpi eq, %arg2, %c0_i32 : i32
    %5 = arith.extui %4 : i1 to i32
    %c0_i32_3 = arith.constant 0 : i32
    %6 = arith.cmpi ne, %5, %c0_i32_3 : i32
    scf.if %6 {
      %c0_8 = arith.constant 0 : index
      %c0_9 = arith.constant 0 : index
      %13 = vector.load %arg6[%c0_8, %c0_9] : memref<16x128xf32, #tpu.memory_space<vmem>>, vector<16x128xf32>
      tpu.vector_store %arg6[%c0_8, %c0_9], %3 {strides = array<i32>} : memref<16x128xf32, #tpu.memory_space<vmem>>, vector<16x128xf32>,
    } else {
    }
    %c0_i32_4 = arith.constant 0 : i32
    %7 = arith.cmpi sgt, %arg2, %c0_i32_4 : i32
    %8 = arith.extui %7 : i1 to i32
    %c0_i32_5 = arith.constant 0 : i32
    %9 = arith.cmpi ne, %8, %c0_i32_5 : i32
    scf.if %9 {
      %c0_8 = arith.constant 0 : index
      %c0_9 = arith.constant 0 : index
      %13 = vector.load %arg6[%c0_8, %c0_9] : memref<16x128xf32, #tpu.memory_space<vmem>>, vector<16x128xf32>
      %14 = arith.addf %13, %3 : vector<16x128xf32>
      %c0_10 = arith.constant 0 : index
      %c0_11 = arith.constant 0 : index
      %15 = vector.load %arg6[%c0_10, %c0_11] : memref<16x128xf32, #tpu.memory_space<vmem>>, vector<16x128xf32>
      tpu.vector_store %arg6[%c0_10, %c0_11], %14 {strides = array<i32>} : memref<16x128xf32, #tpu.memory_space<vmem>>, vector<16x128xf32>,
    } else {
    }
    %c0_i32_6 = arith.constant 0 : i32
    %10 = arith.cmpi eq, %arg2, %c0_i32_6 : i32
    %11 = arith.extui %10 : i1 to i32
    %c0_i32_7 = arith.constant 0 : i32
    %12 = arith.cmpi ne, %11, %c0_i32_7 : i32
    scf.if %12 {
      %c0_8 = arith.constant 0 : index
      %c0_9 = arith.constant 0 : index
      %13 = vector.load %arg6[%c0_8, %c0_9] : memref<16x128xf32, #tpu.memory_space<vmem>>, vector<16x128xf32>
      %c0_10 = arith.constant 0 : index
      %c0_11 = arith.constant 0 : index
      %14 = vector.load %arg5[%c0_10, %c0_11] : memref<16x1xf32, #tpu.memory_space<vmem>>, vector<16x1xf32>
      %15 = vector.broadcast %14 : vector<16x1xf32> to vector<16x128xf32>
      %16 = arith.mulf %13, %15 : vector<16x128xf32>
      %c0_12 = arith.constant 0 : index
      %c0_13 = arith.constant 0 : index
      %17 = vector.load %arg6[%c0_12, %c0_13] : memref<16x128xf32, #tpu.memory_space<vmem>>, vector<16x128xf32>
      tpu.vector_store %arg6[%c0_12, %c0_13], %16 {strides = array<i32>} : memref<16x128xf32, #tpu.memory_space<vmem>>, vector<16x128xf32>,
    } else {
    }
    return
  }
  func.func @transform_0(%arg0: i32, %arg1: i32, %arg2: i32) -> (i32, i32) {
    %c0_i32 = arith.constant 0 : i32
    return %arg0, %arg2 : i32, i32
  }
  func.func @transform_1(%arg0: i32, %arg1: i32, %arg2: i32) -> (i32, i32) {
    %c0_i32 = arith.constant 0 : i32
    return %arg2, %arg1 : i32, i32
  }
  func.func @transform_2(%arg0: i32, %arg1: i32, %arg2: i32) -> (i32, i32) {
    %c0_i32 = arith.constant 0 : i32
    %c0_i32_0 = arith.constant 0 : i32
    return %arg0, %c0_i32 : i32, i32
  }
  func.func @transform_3(%arg0: i32, %arg1: i32, %arg2: i32) -> (i32, i32) {
    %c0_i32 = arith.constant 0 : i32
    return %arg0, %arg1 : i32, i32
  }
}

</mosaic_0001>

<bundles_post_ra>
// kernel: _lambda_.1
= control target key start
LH: loop header
LB: loop body
LE: loop exit
PB: predicated region body
PF: predicated region fallthrough
CT: control target
= control target key end

     0   :  { %v222_v2 = vmov 0   ;;  %s285_s0 = inlined_call_operand.vmem [shape: f32[16,128], index: 0, kind: input, shape index: {}]   ;;  %s286_s1 = inlined_call_operand.vmem [shape: bf16[128,128], index: 1, kind: input, shape index: {}]   ;;  %s287_s2 = inlined_call_operand.vmem [shape: f32[16,1], index: 2, kind: input, shape index: {}]   ;;  %s288_s3 = inlined_call_operand.hbm [shape: f32[16,128], index: 3, kind: output, shape index: {}]  }
   0x1   :  { %v190_v0 = vld [vmem:[%s286_s1 + $0x38] sm:$0xff]  ;;  %v189_v1 = vld [vmem:[%s286_s1 + $0x30] sm:$0xff]  ;;  %195 = vset.pattern.permute.xlu0 %v222_v2  ;;  %v117_v3 = vld [vmem:[%s287_s2] sm:$0xff] }
   0x2   :  { %82 = vmatpush.bf16.msra.mxu0 %v190_v0  ;;  %121 = vperm.xlu0 %195, %v117_v3  }
   0x3   :  { %8 = vsyncpa [#allocation3], 0  ;;  %v188_v4 = vld [vmem:[%s286_s1 + $0x28] sm:$0xff]  ;;  %v187_v6 = vld [vmem:[%s286_s1 + $0x20] sm:$0xff]  ;;  %s223_s8 = smov [#allocation2]   ;;  %s225_s12 = smov 8  }
   0x4   :  { %v118_v5 = vld [vmem:[%s287_s2 + $0x8] sm:$0xff]  ;;  %v186_v7 = vld [vmem:[%s286_s1 + $0x18] sm:$0xff]  ;;  %v185_v8 = vld [vmem:[%s286_s1 + $0x10] sm:$0xff]  ;;  %s137_s9 = sshll.u32 %s223_s8, 4  ;;  %s138_s9 = int_to_ptr.vmem [resolvable:$true] %s137_s9 }
   0x5   :  { %v184_v9 = vld [vmem:[%s286_s1 + $0x8] sm:$0xff]  ;;  %v183_v10 = vld [vmem:[%s286_s1] sm:$0xff]  ;;  %s139_s1 = sshll.u32 %s288_s3, 4  ;;  %s140_s1 = int_to_ptr.hbm [resolvable:$true] %s139_s1 }
   0x6   :  { %83 = vmatpush.bf16.msra.mxu0 %v189_v1  ;;  %v15_v11 = vld [vmem:[%s285_s0] sm:$0xff]  ;;  %v16_v12 = vld [vmem:[%s285_s0 + $0x8] sm:$0xff]  ;;  %s224_s0 = smov 128  }
   0x7   :  { %v17_v13 = vpack.c.bf16 %v16_v12, %v15_v11 }
   0xa   :  { %84 = vmatpush.bf16.msra.mxu0 %v188_v4  ;;  %126 = vperm.xlu0 %195, %v118_v5  }
   0xe   :  { %85 = vmatpush.bf16.msra.mxu0 %v187_v6 }
  0x12   :  { %86 = vmatpush.bf16.msra.mxu0 %v186_v7 }
  0x16   :  { %87 = vmatpush.bf16.msra.mxu0 %v185_v8 }
  0x1a   :  { %88 = vmatpush.bf16.msra.mxu0 %v184_v9 }
  0x1e   :  { %89 = vmatpush.bf16.msra.mxu0 %v183_v10 }
  0x21   :  { %90 = vmatmul.bf16.vlgmr.msra.gmra.mxu0 %v17_v13 }
  0x74   :  { %v122_v14 = vpop.permute.xlu0 %121 }
  0x7c   :  { %v127_v17 = vpop.permute.xlu0 %126 }
  0x9e   :  { %v91_v15 = vpop.f32.mrf.mxu0 }
  0x9f   :  { %v129_v16 = vmul.f32 %v122_v14, %v91_v15 }
  0xa1   :  { %131 = vst [vmem:[#allocation2] sm:$0xff] %v129_v16 }
  0xa6   :  { %v93_v18 = vpop.f32.mrf.mxu0 }
  0xa7   :  { %v130_v19 = vmul.f32 %v127_v17, %v93_v18 }
  0xa9   :  { %132 = vst [vmem:[#allocation2 + $0x8] sm:$0xff] %v130_v19 }
  0xaa   :  { %145 = dma.vmem_to_hbm [thread:$0]  %s138_s9, 256, %s140_s1, [#allocation3], %s224_s0, %s224_s0, %s225_s12  }
  0xab   :  { %220 = dma.done.wait [#allocation3], 256  }
  0xac   :  { %221 = vsyncadd [#allocation3], 4294967040 }
  0xad   :  { %150 = vsyncpa [#allocation3], 1 }

</bundles_post_ra>
